<compile_context>
chip_gen: v6e
topology: v6e:2x2x1
jax: 0.10.0
libtpu: 0.0.40
codegen_flags: <defaults>
</compile_context>

<pallas_src>
import jax
import jax.numpy as jnp
from jax.experimental import pallas as pl
from jax.experimental.pallas import tpu as pltpu


def _round_up(x, m):
    return (x + m - 1) // m * m


def _cdiv(a, b):
    return -(-a // b)


# -----------------------------------------------------------------------------
# Kernel factory
# -----------------------------------------------------------------------------
def _make_attention_kernel(tb, cv, cv_pad):
    """Kernel over (TB, C, TN) blocks.

    Weight rows [0:cv] are the folded conv+BN map (rows [cv:cv_pad] are zero
    padding), rows [cv_pad:cv_pad+2] are the folded fc1/fc2/fc3 gate logits.
    cv_pad is a multiple of 8, so the gate slice starts on a sublane-tile
    boundary and costs nothing.
    """

    def kernel(pseudo_ref, valid_ref, wp_ref, bp_ref, wv_ref, bv_ref,
               pa_ref, va_ref):
        wp = wp_ref[...]                     # (cv_pad+2, Cp)
        bp = bp_ref[...]                     # (cv_pad+2, 1)
        wv = wv_ref[...]                     # (cv_pad+2, Cv)
        bv = bv_ref[...]                     # (cv_pad+2, 1)

        for bi in range(tb):                 # static unroll over the batch block
            out_p = jnp.dot(wp, pseudo_ref[bi],
                            preferred_element_type=jnp.float32) + bp   # (cv_pad+2, TN)
            out_v = jnp.dot(wv, valid_ref[bi],
                            preferred_element_type=jnp.float32) + bv   # (cv_pad+2, TN)

            gate = jax.nn.sigmoid(out_p[cv_pad:cv_pad + 2, :]
                                  + out_v[cv_pad:cv_pad + 2, :])        # (2, TN)

            pa_ref[bi] = jnp.maximum(out_p[:cv, :], 0.0) * gate[0:1, :]  # (Cv, TN)
            va_ref[bi] = jnp.maximum(out_v[:cv, :], 0.0) * gate[1:2, :]  # (Cv, TN)

    return kernel


# -----------------------------------------------------------------------------
# Parameter folding (fc1/fc2/fc3 -> gate rows; conv+BN -> linear; 8-row padding)
# -----------------------------------------------------------------------------
def fold_params(params, eps=1e-5):
    fc1_w, fc1_b = params["fc1_w"], params["fc1_b"]   # (mid, Cp), (mid,)
    fc2_w, fc2_b = params["fc2_w"], params["fc2_b"]   # (mid, Cv), (mid,)
    fc3_w, fc3_b = params["fc3_w"], params["fc3_b"]   # (2, 2*mid), (2,)
    mid = fc1_w.shape[0]

    # logits = fc3([fc1(x_p), fc2(x_v)])  (all linear, no activation in between)
    wp_gate = fc3_w[:, :mid] @ fc1_w                                    # (2, Cp)
    wv_gate = fc3_w[:, mid:] @ fc2_w                                    # (2, Cv)
    b_gate = fc3_w[:, :mid] @ fc1_b + fc3_w[:, mid:] @ fc2_b + fc3_b    # (2,)

    def fold_conv_bn(w, b, g, beta, m, v):
        s = g / jnp.sqrt(v + eps)
        return w * s[:, None], (b - m) * s + beta

    w_c1, b_c1 = fold_conv_bn(params["conv1_w"], params["conv1_b"],
                              params["bn1_g"], params["bn1_b"],
                              params["bn1_m"], params["bn1_v"])
    w_c2, b_c2 = fold_conv_bn(params["conv2_w"], params["conv2_b"],
                              params["bn2_g"], params["bn2_b"],
                              params["bn2_m"], params["bn2_v"])

    cv = w_c1.shape[0]
    cv_pad = _round_up(cv, 8)          # keep gate rows on a sublane-tile boundary
    rpad = cv_pad - cv

    def pad_rows(w, b):
        if rpad:
            w = jnp.concatenate([w, jnp.zeros((rpad, w.shape[1]), w.dtype)], 0)
            b = jnp.concatenate([b, jnp.zeros((rpad,), b.dtype)], 0)
        return w, b

    w_c1, b_c1 = pad_rows(w_c1, b_c1)
    w_c2, b_c2 = pad_rows(w_c2, b_c2)

    w_pseudo = jnp.concatenate([w_c1, wp_gate], axis=0)                 # (cv_pad+2, Cp)
    b_pseudo = jnp.concatenate([b_c1, b_gate], axis=0)[:, None]         # (cv_pad+2, 1)
    w_valid = jnp.concatenate([w_c2, wv_gate], axis=0)                  # (cv_pad+2, Cv)
    b_valid = jnp.concatenate(
        [b_c2, jnp.zeros((2,), b_c2.dtype)], axis=0)[:, None]           # (cv_pad+2, 1)
    return w_pseudo, b_pseudo, w_valid, b_valid, cv_pad


# -----------------------------------------------------------------------------
# Tile selection / VMEM budgeting
# -----------------------------------------------------------------------------
def _default_max_tile():
    """Per-generation point tile targeting ~85-90% of HBM roofline."""
    try:
        kind = jax.devices()[0].device_kind.lower()
    except Exception:
        return 8192
    if "v7" in kind:
        return 32768
    if "v6" in kind:
        return 16384
    return 8192                        # v5e / unknown: keep VMEM footprint modest


def _pick_tiles(b, n, max_tile, max_batch_block=16):
    """Returns (tb, b_pad, tn, n_pad) with tn a multiple of 128."""
    n128 = _round_up(n, 128)
    t = _cdiv(n128, max_tile)                       # number of point tiles
    tn = _round_up(_cdiv(n128, t), 128)
    if b * t < 2 and tn >= 256:                     # keep >=2 parallel steps (v7x 2 TCs)
        t = 2
        tn = _round_up(_cdiv(n128, 2), 128)
    n_pad = t * tn
    tb = max(1, min(b, max_batch_block, max_tile // tn))   # batch-block small-N path
    b_pad = _round_up(b, tb)
    return tb, b_pad, tn, n_pad


def _vmem_limit_bytes(tb, cp, cv, rows, tn):
    item = 4
    io = tb * tn * (cp + 3 * cv) * item            # inputs (Cp+Cv) + outputs (2*Cv)
    wgt = rows * (cp + cv + 2) * item              # folded weights + biases
    temps = 6 * tb * rows * tn * item              # out_p/out_v + elementwise temporaries
    total = 2 * (io + wgt) + temps + (2 << 20)     # double-buffered I/O + headroom
    total = max(total, 32 << 20)                   # never below the default scoped limit
    return int(min(total, 56 << 20))               # stay under v7x's 64 MiB physical VMEM


# -----------------------------------------------------------------------------
# Wrapper
# -----------------------------------------------------------------------------
def attention_forward(pseudo_feas, valid_feas, params, *, max_tile=None):
    """pseudo_feas: (B, Cp, N), valid_feas: (B, Cv, N)  ->  two (B, Cv, N)."""
    B, Cp, N = pseudo_feas.shape
    Cv = valid_feas.shape[1]
    w_pseudo, b_pseudo, w_valid, b_valid, cv_pad = fold_params(params)
    rows = int(w_pseudo.shape[0])

    if max_tile is None:
        max_tile = _default_max_tile()
    assert max_tile % 128 == 0, "max_tile must be a multiple of 128"

    tb, b_pad, tn, n_pad = _pick_tiles(B, N, max_tile)

    # Pad batch/points so stores stay lane-dense (unmasked vst) and the tile
    # grid is exact; outputs are sliced back below.
    if (b_pad, n_pad) != (B, N):
        padding = ((0, b_pad - B), (0, 0), (0, n_pad - N))
        pseudo_feas = jnp.pad(pseudo_feas, padding)
        valid_feas = jnp.pad(valid_feas, padding)

    grid = (b_pad // tb, n_pad // tn)

    def pts_spec(c):
        return pl.BlockSpec((tb, c, tn), lambda bi, ni: (bi, 0, ni))

    def full_spec(shape):
        return pl.BlockSpec(shape, lambda bi, ni: (0,) * len(shape))

    out_shapes = (jax.ShapeDtypeStruct((b_pad, Cv, n_pad), jnp.float32),
                  jax.ShapeDtypeStruct((b_pad, Cv, n_pad), jnp.float32))

    grid_spec = pltpu.PrefetchScalarGridSpec(
        num_scalar_prefetch=0,
        grid=grid,
        in_specs=[
            pts_spec(Cp), pts_spec(Cv),
            full_spec(w_pseudo.shape), full_spec(b_pseudo.shape),
            full_spec(w_valid.shape), full_spec(b_valid.shape),
        ],
        out_specs=[pts_spec(Cv), pts_spec(Cv)],
    )

    pa, va = pl.pallas_call(
        _make_attention_kernel(tb, Cv, cv_pad),
        out_shape=out_shapes,
        grid_spec=grid_spec,
        compiler_params=pltpu.CompilerParams(
            dimension_semantics=("parallel", "parallel"),
            vmem_limit_bytes=_vmem_limit_bytes(tb, Cp, Cv, rows, tn)),
    )(pseudo_feas, valid_feas, w_pseudo, b_pseudo, w_valid, b_valid)

    if (b_pad, n_pad) != (B, N):
        pa = pa[:B, :, :N]
        va = va[:B, :, :N]
    return pa, va


# -----------------------------------------------------------------------------
# Synthetic parameters (PyTorch-convention shapes) and pure-JAX reference
# -----------------------------------------------------------------------------
def make_params(key, pseudo_in, valid_in):
    mid = valid_in // 4
    ks = jax.random.split(key, 18)

    def n(k, shape, scale=0.1):
        return scale * jax.random.normal(k, shape, dtype=jnp.float32)

    return dict(
        fc1_w=n(ks[0], (mid, pseudo_in)), fc1_b=n(ks[1], (mid,)),
        fc2_w=n(ks[2], (mid, valid_in)), fc2_b=n(ks[3], (mid,)),
        fc3_w=n(ks[4], (2, 2 * mid)), fc3_b=n(ks[5], (2,)),
        conv1_w=n(ks[6], (valid_in, pseudo_in)), conv1_b=n(ks[7], (valid_in,)),
        bn1_g=1.0 + n(ks[8], (valid_in,)), bn1_b=n(ks[9], (valid_in,)),
        bn1_m=n(ks[10], (valid_in,)), bn1_v=0.5 + jnp.abs(n(ks[11], (valid_in,))),
        conv2_w=n(ks[12], (valid_in, valid_in)), conv2_b=n(ks[13], (valid_in,)),
        bn2_g=1.0 + n(ks[14], (valid_in,)), bn2_b=n(ks[15], (valid_in,)),
        bn2_m=n(ks[16], (valid_in,)), bn2_v=0.5 + jnp.abs(n(ks[17], (valid_in,))),
    )


def attention_reference(pseudo_feas, valid_feas, params, eps=1e-5):
    """Pure-JAX mirror of the PyTorch forward (eval-mode BatchNorm).

    The kernel folds the linear layers, so agreement is to ~1e-4, not bitwise.
    """
    B, Cp, N = pseudo_feas.shape
    Cv = valid_feas.shape[1]
    pf = jnp.transpose(pseudo_feas, (0, 2, 1)).reshape(-1, Cp)
    vf = jnp.transpose(valid_feas, (0, 2, 1)).reshape(-1, Cv)
    h1 = pf @ params["fc1_w"].T + params["fc1_b"]
    h2 = vf @ params["fc2_w"].T + params["fc2_b"]
    logits = jnp.concatenate([h1, h2], -1) @ params["fc3_w"].T + params["fc3_b"]
    gate = jax.nn.sigmoid(logits)
    pw = gate[:, 0].reshape(B, 1, N)
    vw = gate[:, 1].reshape(B, 1, N)

    def conv_bn_relu(x, w, b, g, beta, m, v):
        y = jnp.einsum("oi,bin->bon", w, x) + b[None, :, None]
        y = (y - m[None, :, None]) / jnp.sqrt(v[None, :, None] + eps)
        y = y * g[None, :, None] + beta[None, :, None]
        return jnp.maximum(y, 0.0)

    pa = conv_bn_relu(pseudo_feas, params["conv1_w"], params["conv1_b"],
                      params["bn1_g"], params["bn1_b"],
                      params["bn1_m"], params["bn1_v"]) * pw
    va = conv_bn_relu(valid_feas, params["conv2_w"], params["conv2_b"],
                      params["bn2_g"], params["bn2_b"],
                      params["bn2_m"], params["bn2_v"]) * vw
    return pa, va


# -----------------------------------------------------------------------------
# Demo / check
# -----------------------------------------------------------------------------
if __name__ == "__main__":
    B, PSEUDO_IN, VALID_IN = 2, 8, 16
    key = jax.random.PRNGKey(0)
    k_in1, k_in2, k_par = jax.random.split(key, 3)
    params = make_params(k_par, PSEUDO_IN, VALID_IN)

    # 1) Small N: padded to one 128-lane tile, batch-blocked single grid step.
    N = 16
    pf = jax.random.normal(k_in1, (B, PSEUDO_IN, N), dtype=jnp.float32)
    vf = jax.random.normal(k_in2, (B, VALID_IN, N), dtype=jnp.float32)
    pa, va = attention_forward(pf, vf, params)
    jax.block_until_ready((pa, va))
    pa_ref, va_ref = attention_reference(pf, vf, params)
    assert pa.shape == (B, VALID_IN, N) and va.shape == (B, VALID_IN, N)
    assert jnp.allclose(pa, pa_ref, atol=1e-4, rtol=1e-4)
    assert jnp.allclose(va, va_ref, atol=1e-4, rtol=1e-4)

    # 2) Multi-tile path along both grid axes (max_tile forced down to 128).
    N2 = 256
    pf2 = jax.random.normal(jax.random.PRNGKey(1), (B, PSEUDO_IN, N2), jnp.float32)
    vf2 = jax.random.normal(jax.random.PRNGKey(2), (B, VALID_IN, N2), jnp.float32)
    pa2, va2 = attention_forward(pf2, vf2, params, max_tile=128)
    jax.block_until_ready((pa2, va2))
    pa2_ref, va2_ref = attention_reference(pf2, vf2, params)
    assert jnp.allclose(pa2, pa2_ref, atol=1e-4, rtol=1e-4)
    assert jnp.allclose(va2, va2_ref, atol=1e-4, rtol=1e-4)

    # 3) Unaligned N (wrapper pads to 128, slices back) + B=1 two-step split.
    N3 = 200
    pf3 = jax.random.normal(jax.random.PRNGKey(3), (1, PSEUDO_IN, N3), jnp.float32)
    vf3 = jax.random.normal(jax.random.PRNGKey(4), (1, VALID_IN, N3), jnp.float32)
    pa3, va3 = attention_forward(pf3, vf3, params)
    jax.block_until_ready((pa3, va3))
    pa3_ref, va3_ref = attention_reference(pf3, vf3, params)
    assert pa3.shape == (1, VALID_IN, N3)
    assert jnp.allclose(pa3, pa3_ref, atol=1e-4, rtol=1e-4)
    assert jnp.allclose(va3, va3_ref, atol=1e-4, rtol=1e-4)

    print("KERNEL_OK")
</pallas_src>

<mosaic_0001>
module attributes {stable_mosaic.version = 11 : i64} {
  func.func @kernel(%arg0: i32, %arg1: i32, %arg2: memref<2x8x128xf32, #tpu.memory_space<vmem>>, %arg3: memref<2x16x128xf32, #tpu.memory_space<vmem>>, %arg4: memref<18x8xf32, #tpu.memory_space<vmem>>, %arg5: memref<18x1xf32, #tpu.memory_space<vmem>>, %arg6: memref<18x16xf32, #tpu.memory_space<vmem>>, %arg7: memref<18x1xf32, #tpu.memory_space<vmem>>, %arg8: memref<2x16x128xf32, #tpu.memory_space<vmem>>, %arg9: memref<2x16x128xf32, #tpu.memory_space<vmem>>) attributes {dimension_semantics = [#tpu.dimension_semantics<parallel>, #tpu.dimension_semantics<parallel>], iteration_bounds = array<i64: 1, 1>, scalar_prefetch = 0 : i64, scratch_operands = 0 : i64, tpu.core_type = #tpu.core_type<tc>, window_params = [{transform_indices = @transform_0, window_bounds = array<i64: 2, 8, 128>}, {transform_indices = @transform_1, window_bounds = array<i64: 2, 16, 128>}, {pipeline_mode = #tpu.pipeline_mode<synchronous>, transform_indices = @transform_2, window_bounds = array<i64: 18, 8>}, {pipeline_mode = #tpu.pipeline_mode<synchronous>, transform_indices = @transform_3, window_bounds = array<i64: 18, 1>}, {pipeline_mode = #tpu.pipeline_mode<synchronous>, transform_indices = @transform_4, window_bounds = array<i64: 18, 16>}, {pipeline_mode = #tpu.pipeline_mode<synchronous>, transform_indices = @transform_5, window_bounds = array<i64: 18, 1>}, {transform_indices = @transform_6, window_bounds = array<i64: 2, 16, 128>}, {transform_indices = @transform_7, window_bounds = array<i64: 2, 16, 128>}]} {
    %c0 = arith.constant 0 : index
    %c0_0 = arith.constant 0 : index
    %0 = vector.load %arg4[%c0, %c0_0] : memref<18x8xf32, #tpu.memory_space<vmem>>, vector<18x8xf32>
    %c0_1 = arith.constant 0 : index
    %c0_2 = arith.constant 0 : index
    %1 = vector.load %arg5[%c0_1, %c0_2] : memref<18x1xf32, #tpu.memory_space<vmem>>, vector<18x1xf32>
    %c0_3 = arith.constant 0 : index
    %c0_4 = arith.constant 0 : index
    %2 = vector.load %arg6[%c0_3, %c0_4] : memref<18x16xf32, #tpu.memory_space<vmem>>, vector<18x16xf32>
    %c0_5 = arith.constant 0 : index
    %c0_6 = arith.constant 0 : index
    %3 = vector.load %arg7[%c0_5, %c0_6] : memref<18x1xf32, #tpu.memory_space<vmem>>, vector<18x1xf32>
    %c0_7 = arith.constant 0 : index
    %c0_8 = arith.constant 0 : index
    %c0_9 = arith.constant 0 : index
    %4 = vector.load %arg2[%c0_7, %c0_8, %c0_9] : memref<2x8x128xf32, #tpu.memory_space<vmem>>, vector<1x8x128xf32>
    %5 = vector.shape_cast %4 : vector<1x8x128xf32> to vector<8x128xf32>
    %cst = arith.constant dense<0.000000e+00> : vector<18x128xf32>
    %6 = tpu.matmul %0, %5, %cst {dimension_numbers = #tpu.dot_dimension_numbers<[1], [0], [0], [1], [0, 0, 1, 1], [], []>} : vector<18x8xf32>, vector<8x128xf32>, vector<18x128xf32> -> vector<18x128xf32>
    %7 = vector.broadcast %1 : vector<18x1xf32> to vector<18x128xf32>
    %8 = arith.addf %6, %7 : vector<18x128xf32>
    %c0_10 = arith.constant 0 : index
    %c0_11 = arith.constant 0 : index
    %c0_12 = arith.constant 0 : index
    %9 = vector.load %arg3[%c0_10, %c0_11, %c0_12] : memref<2x16x128xf32, #tpu.memory_space<vmem>>, vector<1x16x128xf32>
    %10 = vector.shape_cast %9 : vector<1x16x128xf32> to vector<16x128xf32>
    %cst_13 = arith.constant dense<0.000000e+00> : vector<18x128xf32>
    %11 = tpu.matmul %2, %10, %cst_13 {dimension_numbers = #tpu.dot_dimension_numbers<[1], [0], [0], [1], [0, 0, 1, 1], [], []>} : vector<18x16xf32>, vector<16x128xf32>, vector<18x128xf32> -> vector<18x128xf32>
    %12 = vector.broadcast %3 : vector<18x1xf32> to vector<18x128xf32>
    %13 = arith.addf %11, %12 : vector<18x128xf32>
    %14 = vector.extract_strided_slice %8 {offsets = [16, 0], sizes = [2, 128], strides = [1, 1]} : vector<18x128xf32> to vector<2x128xf32>
    %15 = vector.extract_strided_slice %13 {offsets = [16, 0], sizes = [2, 128], strides = [1, 1]} : vector<18x128xf32> to vector<2x128xf32>
    %16 = arith.addf %14, %15 : vector<2x128xf32>
    %17 = arith.negf %16 : vector<2x128xf32>
    %18 = math.exp %17 : vector<2x128xf32>
    %cst_14 = arith.constant 1.000000e+00 : f32
    %19 = vector.broadcast %cst_14 : f32 to vector<2x128xf32>
    %20 = arith.addf %19, %18 : vector<2x128xf32>
    %21 = arith.divf %19, %20 : vector<2x128xf32>
    %22 = vector.extract_strided_slice %8 {offsets = [0, 0], sizes = [16, 128], strides = [1, 1]} : vector<18x128xf32> to vector<16x128xf32>
    %cst_15 = arith.constant 0.000000e+00 : f32
    %23 = vector.broadcast %cst_15 : f32 to vector<16x128xf32>
    %24 = arith.maximumf %22, %23 : vector<16x128xf32>
    %25 = vector.extract_strided_slice %21 {offsets = [0, 0], sizes = [1, 128], strides = [1, 1]} : vector<2x128xf32> to vector<1x128xf32>
    %26 = vector.broadcast %25 : vector<1x128xf32> to vector<16x128xf32>
    %27 = arith.mulf %24, %26 : vector<16x128xf32>
    %c0_16 = arith.constant 0 : index
    %c0_17 = arith.constant 0 : index
    %c0_18 = arith.constant 0 : index
    %28 = vector.load %arg8[%c0_16, %c0_17, %c0_18] : memref<2x16x128xf32, #tpu.memory_space<vmem>>, vector<1x16x128xf32>
    %29 = vector.shape_cast %28 : vector<1x16x128xf32> to vector<16x128xf32>
    %30 = vector.shape_cast %27 : vector<16x128xf32> to vector<1x16x128xf32>
    tpu.vector_store %arg8[%c0_16, %c0_17, %c0_18], %30 {strides = array<i32>} : memref<2x16x128xf32, #tpu.memory_space<vmem>>, vector<1x16x128xf32>,
    %31 = vector.extract_strided_slice %13 {offsets = [0, 0], sizes = [16, 128], strides = [1, 1]} : vector<18x128xf32> to vector<16x128xf32>
    %cst_19 = arith.constant 0.000000e+00 : f32
    %32 = vector.broadcast %cst_19 : f32 to vector<16x128xf32>
    %33 = arith.maximumf %31, %32 : vector<16x128xf32>
    %34 = vector.extract_strided_slice %21 {offsets = [1, 0], sizes = [1, 128], strides = [1, 1]} : vector<2x128xf32> to vector<1x128xf32>
    %35 = vector.broadcast %34 : vector<1x128xf32> to vector<16x128xf32>
    %36 = arith.mulf %33, %35 : vector<16x128xf32>
    %c0_20 = arith.constant 0 : index
    %c0_21 = arith.constant 0 : index
    %c0_22 = arith.constant 0 : index
    %37 = vector.load %arg9[%c0_20, %c0_21, %c0_22] : memref<2x16x128xf32, #tpu.memory_space<vmem>>, vector<1x16x128xf32>
    %38 = vector.shape_cast %37 : vector<1x16x128xf32> to vector<16x128xf32>
    %39 = vector.shape_cast %36 : vector<16x128xf32> to vector<1x16x128xf32>
    tpu.vector_store %arg9[%c0_20, %c0_21, %c0_22], %39 {strides = array<i32>} : memref<2x16x128xf32, #tpu.memory_space<vmem>>, vector<1x16x128xf32>,
    %c1 = arith.constant 1 : index
    %c0_23 = arith.constant 0 : index
    %c0_24 = arith.constant 0 : index
    %40 = vector.load %arg2[%c1, %c0_23, %c0_24] : memref<2x8x128xf32, #tpu.memory_space<vmem>>, vector<1x8x128xf32>
    %41 = vector.shape_cast %40 : vector<1x8x128xf32> to vector<8x128xf32>
    %cst_25 = arith.constant dense<0.000000e+00> : vector<18x128xf32>
    %42 = tpu.matmul %0, %41, %cst_25 {dimension_numbers = #tpu.dot_dimension_numbers<[1], [0], [0], [1], [0, 0, 1, 1], [], []>} : vector<18x8xf32>, vector<8x128xf32>, vector<18x128xf32> -> vector<18x128xf32>
    %43 = vector.broadcast %1 : vector<18x1xf32> to vector<18x128xf32>
    %44 = arith.addf %42, %43 : vector<18x128xf32>
    %c1_26 = arith.constant 1 : index
    %c0_27 = arith.constant 0 : index
    %c0_28 = arith.constant 0 : index
    %45 = vector.load %arg3[%c1_26, %c0_27, %c0_28] : memref<2x16x128xf32, #tpu.memory_space<vmem>>, vector<1x16x128xf32>
    %46 = vector.shape_cast %45 : vector<1x16x128xf32> to vector<16x128xf32>
    %cst_29 = arith.constant dense<0.000000e+00> : vector<18x128xf32>
    %47 = tpu.matmul %2, %46, %cst_29 {dimension_numbers = #tpu.dot_dimension_numbers<[1], [0], [0], [1], [0, 0, 1, 1], [], []>} : vector<18x16xf32>, vector<16x128xf32>, vector<18x128xf32> -> vector<18x128xf32>
    %48 = vector.broadcast %3 : vector<18x1xf32> to vector<18x128xf32>
    %49 = arith.addf %47, %48 : vector<18x128xf32>
    %50 = vector.extract_strided_slice %44 {offsets = [16, 0], sizes = [2, 128], strides = [1, 1]} : vector<18x128xf32> to vector<2x128xf32>
    %51 = vector.extract_strided_slice %49 {offsets = [16, 0], sizes = [2, 128], strides = [1, 1]} : vector<18x128xf32> to vector<2x128xf32>
    %52 = arith.addf %50, %51 : vector<2x128xf32>
    %53 = arith.negf %52 : vector<2x128xf32>
    %54 = math.exp %53 : vector<2x128xf32>
    %cst_30 = arith.constant 1.000000e+00 : f32
    %55 = vector.broadcast %cst_30 : f32 to vector<2x128xf32>
    %56 = arith.addf %55, %54 : vector<2x128xf32>
    %57 = arith.divf %55, %56 : vector<2x128xf32>
    %58 = vector.extract_strided_slice %44 {offsets = [0, 0], sizes = [16, 128], strides = [1, 1]} : vector<18x128xf32> to vector<16x128xf32>
    %cst_31 = arith.constant 0.000000e+00 : f32
    %59 = vector.broadcast %cst_31 : f32 to vector<16x128xf32>
    %60 = arith.maximumf %58, %59 : vector<16x128xf32>
    %61 = vector.extract_strided_slice %57 {offsets = [0, 0], sizes = [1, 128], strides = [1, 1]} : vector<2x128xf32> to vector<1x128xf32>
    %62 = vector.broadcast %61 : vector<1x128xf32> to vector<16x128xf32>
    %63 = arith.mulf %60, %62 : vector<16x128xf32>
    %c1_32 = arith.constant 1 : index
    %c0_33 = arith.constant 0 : index
    %c0_34 = arith.constant 0 : index
    %64 = vector.load %arg8[%c1_32, %c0_33, %c0_34] : memref<2x16x128xf32, #tpu.memory_space<vmem>>, vector<1x16x128xf32>
    %65 = vector.shape_cast %64 : vector<1x16x128xf32> to vector<16x128xf32>
    %66 = vector.shape_cast %63 : vector<16x128xf32> to vector<1x16x128xf32>
    tpu.vector_store %arg8[%c1_32, %c0_33, %c0_34], %66 {strides = array<i32>} : memref<2x16x128xf32, #tpu.memory_space<vmem>>, vector<1x16x128xf32>,
    %67 = vector.extract_strided_slice %49 {offsets = [0, 0], sizes = [16, 128], strides = [1, 1]} : vector<18x128xf32> to vector<16x128xf32>
    %cst_35 = arith.constant 0.000000e+00 : f32
    %68 = vector.broadcast %cst_35 : f32 to vector<16x128xf32>
    %69 = arith.maximumf %67, %68 : vector<16x128xf32>
    %70 = vector.extract_strided_slice %57 {offsets = [1, 0], sizes = [1, 128], strides = [1, 1]} : vector<2x128xf32> to vector<1x128xf32>
    %71 = vector.broadcast %70 : vector<1x128xf32> to vector<16x128xf32>
    %72 = arith.mulf %69, %71 : vector<16x128xf32>
    %c1_36 = arith.constant 1 : index
    %c0_37 = arith.constant 0 : index
    %c0_38 = arith.constant 0 : index
    %73 = vector.load %arg9[%c1_36, %c0_37, %c0_38] : memref<2x16x128xf32, #tpu.memory_space<vmem>>, vector<1x16x128xf32>
    %74 = vector.shape_cast %73 : vector<1x16x128xf32> to vector<16x128xf32>
    %75 = vector.shape_cast %72 : vector<16x128xf32> to vector<1x16x128xf32>
    tpu.vector_store %arg9[%c1_36, %c0_37, %c0_38], %75 {strides = array<i32>} : memref<2x16x128xf32, #tpu.memory_space<vmem>>, vector<1x16x128xf32>,
    return
  }
  func.func @transform_0(%arg0: i32, %arg1: i32) -> (i32, i32, i32) {
    %c0_i32 = arith.constant 0 : i32
    %c0_i32_0 = arith.constant 0 : i32
    return %arg0, %c0_i32, %arg1 : i32, i32, i32
  }
  func.func @transform_1(%arg0: i32, %arg1: i32) -> (i32, i32, i32) {
    %c0_i32 = arith.constant 0 : i32
    %c0_i32_0 = arith.constant 0 : i32
    return %arg0, %c0_i32, %arg1 : i32, i32, i32
  }
  func.func @transform_2(%arg0: i32, %arg1: i32) -> (i32, i32) {
    %c0_i32 = arith.constant 0 : i32
    %c0_i32_0 = arith.constant 0 : i32
    %c0_i32_1 = arith.constant 0 : i32
    return %c0_i32, %c0_i32_0 : i32, i32
  }
  func.func @transform_3(%arg0: i32, %arg1: i32) -> (i32, i32) {
    %c0_i32 = arith.constant 0 : i32
    %c0_i32_0 = arith.constant 0 : i32
    %c0_i32_1 = arith.constant 0 : i32
    return %c0_i32, %c0_i32_0 : i32, i32
  }
  func.func @transform_4(%arg0: i32, %arg1: i32) -> (i32, i32) {
    %c0_i32 = arith.constant 0 : i32
    %c0_i32_0 = arith.constant 0 : i32
    %c0_i32_1 = arith.constant 0 : i32
    return %c0_i32, %c0_i32_0 : i32, i32
  }
  func.func @transform_5(%arg0: i32, %arg1: i32) -> (i32, i32) {
    %c0_i32 = arith.constant 0 : i32
    %c0_i32_0 = arith.constant 0 : i32
    %c0_i32_1 = arith.constant 0 : i32
    return %c0_i32, %c0_i32_0 : i32, i32
  }
  func.func @transform_6(%arg0: i32, %arg1: i32) -> (i32, i32, i32) {
    %c0_i32 = arith.constant 0 : i32
    %c0_i32_0 = arith.constant 0 : i32
    return %arg0, %c0_i32, %arg1 : i32, i32, i32
  }
  func.func @transform_7(%arg0: i32, %arg1: i32) -> (i32, i32, i32) {
    %c0_i32 = arith.constant 0 : i32
    %c0_i32_0 = arith.constant 0 : i32
    return %arg0, %c0_i32, %arg1 : i32, i32, i32
  }
}

</mosaic_0001>

<bundles_post_ra>
// kernel: tpu_custom_call.1
= control target key start
LH: loop header
LB: loop body
LE: loop exit
PB: predicated region body
PF: predicated region fallthrough
CT: control target
= control target key end

     0   :  { %13 = vsyncpa [#allocation3], 0  ;;  %vm55_vm0 = vcmask 64512   ;;  %v649_v3 = vmov 0.0   ;;  %vm650_vm1 = vmmov 0   ;;  %vm162_vm2 = vcmask 130048   ;;  %s780_s0 = inlined_call_operand.vmem [shape: f32[2,8,128], index: 0, kind: input, shape index: {}]   ;;  %s781_s1 = inlined_call_operand.vmem [shape: f32[2,16,128], index: 1, kind: input, shape index: {}]   ;;  %s782_s2 = inlined_call_operand.vmem [shape: f32[18,8], index: 2, kind: input, shape index: {}]   ;;  %s783_s3 = inlined_call_operand.vmem [shape: f32[18,1], index: 3, kind: input, shape index: {}]   ;;  %s784_s4 = inlined_call_operand.vmem [shape: f32[18,16], index: 4, kind: input, shape index: {}]   ;;  %s785_s5 = inlined_call_operand.vmem [shape: f32[18,1], index: 5, kind: input, shape index: {}]   ;;  %s786_s6 = inlined_call_operand.hbm [shape: f32[2,16,128], index: 6, kind: output, shape index: {0}]   ;;  %s787_s7 = inlined_call_operand.hbm [shape: f32[2,16,128], index: 7, kind: output, shape index: {1}]  }
   0x1   :  { %v39_v0 = vld [vmem:[%s780_s0] sm:$0xff]  ;;  %v146_v1 = vld [vmem:[%s781_s1 + $0x8] sm:$0xff]  ;;  %540 = vmatprep.subr.mxu0 %v649_v3  ;;  %551 = vmatprep.subr.mxu1 %v649_v3  ;;  %v517_v7 = vld [vmem:[%s781_s1 + $0x18] sm:$0xff] }
   0x2   :  { %v27_v2 = vld [vmem:[%s782_s2] sm:$0xff]  ;;  %541 = vmatpush3.msra.mxu0 %v39_v0  ;;  %542 = vmatprep.mubr.msk.f32.mxu0 %vm650_vm1, %v649_v3  ;;  %v512_v6 = vld [vmem:[%s780_s0 + $0x8] sm:$0xff] }
   0x3   :  { %v145_v4 = vld [vmem:[%s781_s1] sm:$0xff]  ;;  %552 = vmatpush3.msra.mxu1 %v146_v1  ;;  %543 = vmatmul.mubr.msk.f32.vlgmr.msra.gmra.mxu0 %vm55_vm0, %v27_v2  ;;  %v28_v8 = vld [vmem:[%s782_s2 + $0x8] sm:$0xff] }
   0x4   :  { %v33_v5 = vld [vmem:[%s784_s4] sm:$0xff]  ;;  %553 = vmatprep.subr.mxu1 %v649_v3  ;;  %555 = vmatprep.mubr.msk.f32.mxu1 %vm650_vm1, %v649_v3 }
   0x5   :  { %554 = vmatpush3.msra.mxu1 %v145_v4  ;;  %564 = vmatprep.subr.mxu0 %v649_v3 }
   0x6   :  { %556 = vmatmul.mubr.msk.f32.vlgmr.msra.gmra.mxu1 %vm162_vm2, %v33_v5  ;;  %575 = vmatprep.subr.mxu1 %v649_v3 }
   0x7   :  { %14 = vsyncpa [#allocation5], 0  ;;  %545 = vmatprep.mubr.msk.f32.mxu0 %vm650_vm1, %v649_v3  ;;  %565 = vmatpush3.msra.mxu0 %v512_v6  ;;  %v34_v9 = vld [vmem:[%s784_s4 + $0x8] sm:$0xff]  ;;  %v516_v10 = vld [vmem:[%s781_s1 + $0x10] sm:$0xff]  ;;  %v651_v14 = vmov 0   ;;  %v261_v58 = vlaneseq  ;;  %s653_s10 = smov [#allocation4]  }
   0x8   :  { %576 = vmatpush3.msra.mxu1 %v517_v7  ;;  %546 = vmatmul.mubr.msk.f32.gmra.mxu0 %vm55_vm0, %v28_v8  ;;  %v29_v11 = vld [vmem:[%s782_s2 + $0x10] sm:$0x3]  ;;  %v30_v15 = vld [vmem:[%s783_s3] sm:$0xff]  ;;  %v31_v17 = vld [vmem:[%s783_s3 + $0x8] sm:$0xff]  ;;  %s490_s11 = sshll.u32 %s653_s10, 4  ;;  %s491_s11 = int_to_ptr.vmem [resolvable:$true] %s490_s11 }
   0x9   :  { %558 = vmatprep.mubr.msk.f32.mxu1 %vm650_vm1, %v649_v3  ;;  %548 = vmatprep.mubr.msk.f32.mxu0 %vm650_vm1, %v649_v3  ;;  %v32_v12 = vld [vmem:[%s783_s3 + $0x10] sm:$0x3]  ;;  %v36_v18 = vld [vmem:[%s785_s5] sm:$0xff]  ;;  %v37_v19 = vld [vmem:[%s785_s5 + $0x8] sm:$0xff]  ;;  %v262_v59 = vshrl.u32 %v261_v58, 7  ;;  %s652_s3 = smov [#allocation2]  }
   0xa   :  { %559 = vmatmul.mubr.msk.f32.gmra.mxu1 %vm162_vm2, %v34_v9  ;;  %577 = vmatprep.subr.mxu1 %v649_v3  ;;  %v35_v13 = vld [vmem:[%s784_s4 + $0x10] sm:$0x3] }
   0xb   :  { %561 = vmatprep.mubr.msk.f32.mxu1 %vm650_vm1, %v649_v3  ;;  %578 = vmatpush3.msra.mxu1 %v516_v10  ;;  %v38_v16 = vld [vmem:[%s785_s5 + $0x10] sm:$0x3]  ;;  %v263_v1 = vsub.s32 0, %v262_v59  ;;  %s478_s5 = sshll.u32 %s652_s3, 4  ;;  %s479_s5 = int_to_ptr.vmem [resolvable:$true] %s478_s5 }
   0xc   :  { %549 = vmatmul.mubr.msk.f32.gmra.mxu0 %vm55_vm0, %v29_v11  ;;  %595 = vset.pattern.permute.xlu0 %v651_v14  ;;  %s605_s12 = scalar_lea.vmem %s479_s5, 512  ;;  %p610_p1 = scmp.lt.s32.totalorder %s479_s5, %s479_s5 }
   0xd   :  { %566 = vmatprep.mubr.msk.f32.mxu0 %vm650_vm1, %v649_v3  ;;  %52 = vperm.xlu0 %595, %v32_v12   ;;  %p606_p0 = scmp.ne.s32.totalorder %s479_s5, %s605_s12  ;;  %p611_p2 = scmp.lt.s32.totalorder %s605_s12, %s605_s12 }
   0xe   :  { %562 = vmatmul.mubr.msk.f32.gmra.mxu1 %vm162_vm2, %v35_v13  ;;  %596 = vset.pattern.permute.xlu1 %v651_v14 }
   0xf   :  { %579 = vmatprep.mubr.msk.f32.mxu1 %vm650_vm1, %v649_v3  ;;  %42 = vperm.xlu1 %596, %v30_v15   ;;  %p612_p3 = por %p611_p2, %p610_p1 }
  0x10   :  { %567 = vmatmul.mubr.msk.f32.vlgmr.msra.gmra.mxu0 %vm55_vm0, %v27_v2 }
  0x11   :  { %569 = vmatprep.mubr.msk.f32.mxu0 %vm650_vm1, %v649_v3  ;;  %159 = vperm.xlu0 %595, %v38_v16   ;;  %p613_p4 = pnand %p612_p3, %p606_p0 }
  0x12   :  { %580 = vmatmul.mubr.msk.f32.vlgmr.msra.gmra.mxu1 %vm162_vm2, %v33_v5  ;;  %v273_v5 = vsub.s32 1, %v262_v59 }
  0x13   :  { %582 = vmatprep.mubr.msk.f32.mxu1 %vm650_vm1, %v649_v3  ;;  %47 = vperm.xlu1 %596, %v31_v17  }
  0x14   :  { %570 = vmatmul.mubr.msk.f32.gmra.mxu0 %vm55_vm0, %v28_v8 }
  0x15   :  { %572 = vmatprep.mubr.msk.f32.mxu0 %vm650_vm1, %v649_v3  ;;  %149 = vperm.xlu0 %595, %v36_v18  }
  0x16   :  { %583 = vmatmul.mubr.msk.f32.gmra.mxu1 %vm162_vm2, %v34_v9 }
  0x17   :  { %585 = vmatprep.mubr.msk.f32.mxu1 %vm650_vm1, %v649_v3  ;;  %154 = vperm.xlu1 %596, %v37_v19  }
  0x18   :  { %573 = vmatmul.mubr.msk.f32.gmra.mxu0 %vm55_vm0, %v29_v11 }
  0x1a   :  { %586 = vmatmul.mubr.msk.f32.gmra.mxu1 %vm162_vm2, %v35_v13 }
  0x88   :  { %v53_v23 = vpop.permute.xlu0 %52 }
  0x8a   :  { %v43_v54 = vpop.permute.xlu1 %42 }
  0x8c   :  { %v160_v30 = vpop.permute.xlu0 %159 }
  0x8e   :  { %v48_v57 = vpop.permute.xlu1 %47 }
  0x90   :  { %v150_v60 = vpop.permute.xlu0 %149 }
  0x92   :  { %v155_v61 = vpop.permute.xlu1 %154 }
  0xc3   :  { %v131_v20 = vpop.f32.mrf.mxu0 }
  0xc4   :  { %v132_v63 = vadd.f32 %v131_v20, %v43_v54 }
  0xc5   :  { %v544_v21 = vpop.f32.mrf.mxu0 }
  0xc6   :  { %v238_v22 = vpop.f32.mrf.mxu1  ;;  %v259_v7 = vmax.f32 %v132_v63, 0.0 }
  0xc7   :  { %v239_v0 = vadd.f32 %v238_v22, %v150_v60 }
  0xc8   :  { %v136_v24 = vpop.f32.mrf.mxu0  ;;  %v557_v25 = vpop.f32.mrf.mxu1 }
  0xc9   :  { %v137_v2 = vadd.f32 %v136_v24, %v48_v57  ;;  %v269_v8 = vmax.f32 %v239_v0, 0.0 }
  0xca   :  { %v547_v26 = vpop.f32.mrf.mxu0  ;;  %v243_v27 = vpop.f32.mrf.mxu1 }
  0xcb   :  { %v244_v3 = vadd.f32 %v243_v27, %v155_v61  ;;  %v260_v9 = vmax.f32 %v137_v2, 0.0 }
  0xcc   :  { %v141_v28 = vpop.f32.mrf.mxu0  ;;  %v560_v29 = vpop.f32.mrf.mxu1 }
  0xcd   :  { %v142_v31 = vadd.f32 %v141_v28, %v53_v23  ;;  %v270_v10 = vmax.f32 %v244_v3, 0.0 }
  0xce   :  { %v550_v32 = vpop.f32.mrf.mxu0  ;;  %v248_v33 = vpop.f32.mrf.mxu1 }
  0xcf   :  { %v249_v34 = vadd.f32 %v248_v33, %v160_v30 }
  0xd0   :  { %v563_v35 = vpop.f32.mrf.mxu1  ;;  %v347_v36 = vpop.f32.mrf.mxu0 }
  0xd1   :  { %v252_v37 = vadd.f32 %v249_v34, %v142_v31  ;;  %v348_v17 = vadd.f32 %v347_v36, %v43_v54 }
  0xd2   :  { %v568_v38 = vpop.f32.mrf.mxu0  ;;  %v430_v39 = vpop.f32.mrf.mxu1 }
  0xd3   :  { %v511_v40 = vmul.f32 -1.442695, %v252_v37  ;;  %v431_v18 = vadd.f32 %v430_v39, %v150_v60  ;;  %v451_v22 = vmax.f32 %v348_v17, 0.0 }
  0xd4   :  { %v352_v41 = vpop.f32.mrf.mxu0  ;;  %v581_v42 = vpop.f32.mrf.mxu1 }
  0xd5   :  { %597 = vpow2.f32 %v511_v40  ;;  %v353_v19 = vadd.f32 %v352_v41, %v48_v57 }
  0xd6   :  { %v571_v43 = vpop.f32.mrf.mxu0  ;;  %v435_v44 = vpop.f32.mrf.mxu1 }
  0xd7   :  { %v436_v20 = vadd.f32 %v435_v44, %v155_v61  ;;  %v452_v24 = vmax.f32 %v353_v19, 0.0 }
  0xd8   :  { %v357_v45 = vpop.f32.mrf.mxu0  ;;  %v584_v46 = vpop.f32.mrf.mxu1 }
  0xd9   :  { %v358_v49 = vadd.f32 %v357_v45, %v53_v23  ;;  %v462_v23 = vmax.f32 %v431_v18, 0.0  ;;  %v463_v25 = vmax.f32 %v436_v20, 0.0 }
  0xda   :  { %v440_v47 = vpop.f32.mrf.mxu1  ;;  %v574_v48 = vpop.f32.mrf.mxu0 }
  0xdb   :  { %v441_v50 = vadd.f32 %v440_v47, %v160_v30 }
  0xdc   :  { %v587_v51 = vpop.f32.mrf.mxu1 }
  0xdd   :  { %v444_v52 = vadd.f32 %v441_v50, %v358_v49 }
  0xdf   :  { %v521_v53 = vmul.f32 -1.442695, %v444_v52 }
  0xe1   :  { %599 = vpow2.f32 %v521_v53 }
  0xe2   :  { %v598_v55 = vpop.eup %597 }
  0xe3   :  { %v256_v56 = vadd.f32 1.0, %v598_v55 }
  0xe5   :  { %601 = vrcp.f32 %v256_v56 }
  0xee   :  { %v600_v62 = vpop.eup %599 }
  0xef   :  { %v448_v4 = vadd.f32 1.0, %v600_v62 }
  0xf1   :  { %603 = vrcp.f32 %v448_v4 }
  0xf2   :  { %v602_v6 = vpop.eup %601 }
  0xf3   :  { %v264_v11 = vrot.slane %v602_v6, %v263_v1  ;;  %v274_v12 = vrot.slane %v602_v6, %v273_v5 }
  0xf5   :  { %v265_v13 = vmul.f32 %v264_v11, %v259_v7  ;;  %v266_v14 = vmul.f32 %v264_v11, %v260_v9  ;;  %v275_v15 = vmul.f32 %v274_v12, %v269_v8  ;;  %v276_v16 = vmul.f32 %v274_v12, %v270_v10 }
  0xf7   :  { %267 = vst [vmem:[#allocation2] sm:$0xff] %v265_v13  ;;  %268 = vst [vmem:[#allocation2 + $0x8] sm:$0xff] %v266_v14 }
  0xf8   :  { %277 = vst [vmem:[#allocation4] sm:$0xff] %v275_v15  ;;  %278 = vst [vmem:[#allocation4 + $0x8] sm:$0xff] %v276_v16 }
  0xfe   :  { %v604_v21 = vpop.eup %603 }
  0xff   :  { %v456_v26 = vrot.slane %v604_v21, %v263_v1  ;;  %v467_v27 = vrot.slane %v604_v21, %v273_v5 }
 0x101   :  { %v457_v28 = vmul.f32 %v456_v26, %v451_v22  ;;  %v458_v29 = vmul.f32 %v456_v26, %v452_v24  ;;  %v468_v30 = vmul.f32 %v467_v27, %v462_v23  ;;  %v469_v31 = vmul.f32 %v467_v27, %v463_v25 }
 0x103   :  { %460 = vst [vmem:[#allocation2 + $0x10] sm:$0xff] %v457_v28  ;;  %461 = vst [vmem:[#allocation2 + $0x18] sm:$0xff] %v458_v29 }
 0x104   :  { %471 = vst [vmem:[#allocation4 + $0x10] sm:$0xff] %v468_v30  ;;  %472 = vst [vmem:[#allocation4 + $0x18] sm:$0xff] %v469_v31 }
 0x105   :  { %616 = shalt.err (!%p613_p4)
}
 0x106   :  { %s654_s13 = smov 128   ;;  %s655_s14 = smov 8  }
 0x107   :  { %484 = dma.vmem_to_hbm [thread:$0]  %s479_s5, 512, %s786_s6, [#allocation3], %s654_s13, %s654_s13, %s655_s14  }
 0x108   :  { %s625_s17 = scalar_lea.vmem %s491_s11, 512  ;;  %p630_p6 = scmp.lt.s32.totalorder %s491_s11, %s491_s11 }
 0x109   :  { %p626_p5 = scmp.ne.s32.totalorder %s491_s11, %s625_s17  ;;  %p631_p7 = scmp.lt.s32.totalorder %s625_s17, %s625_s17 }
 0x10b   :  { %p632_p8 = por %p631_p7, %p630_p6 }
 0x10d   :  { %p633_p9 = pnand %p632_p8, %p626_p5 }
 0x10f   :  { %636 = shalt.err (!%p633_p9)
}
 0x110   :  { %496 = dma.vmem_to_hbm [thread:$0]  %s491_s11, 512, %s787_s7, [#allocation5], %s654_s13, %s654_s13, %s655_s14  }
 0x111   :  { %645 = dma.done.wait [#allocation3], 512  }
 0x112   :  { %646 = vsyncadd [#allocation3], 4294966784 }
 0x113   :  { %647 = dma.done.wait [#allocation5], 512  }
 0x114   :  { %648 = vsyncadd [#allocation5], 4294966784 }
 0x115   :  { %503 = vsyncpa [#allocation3], 1 }
 0x116   :  { %504 = vsyncpa [#allocation5], 1 }

</bundles_post_ra>
